<compile_context>
chip_gen: v6e
topology: v6e:2x2x1
jax: 0.10.0
libtpu: 0.0.40
codegen_flags: <defaults>
</compile_context>

<pallas_src>
import jax
import jax.numpy as jnp
from jax.experimental import pallas as pl
from jax.experimental.pallas import tpu as pltpu


# Preferred tile sizes (capped to the padded problem size at call time).
#  * 256-aligned batch tiles feed the v6e/v7x 256x256 MXU and are still
#    128-aligned for v5e's 128x128 MXU (and a multiple of 8 sublanes).
#  * 512-wide class tiles keep output stores lane-dense/unmasked and put the
#    streamed fc2 weight tiles near the measured ~85%-of-roofline size.
TB_PREF = 256
TN_PREF = 512


def _round_up(x, n):
    return pl.cdiv(x, n) * n


# --------------------------- Pallas kernel ---------------------------------
def _nnlm_kernel(x_ref,     # (TB, K)  f32   gathered + flattened embeddings
                 w1_ref,    # (K, H)   f32   fc1 weight (pre-transposed)
                 b1_ref,    # (1, H)   f32   fc1 bias
                 w2t_ref,   # (H, TN)  bf16  fc2 weight^T tile (streamed)
                 b2_ref,    # (1, TN)  f32   fc2 bias tile
                 out_ref,   # (TB, TN) f32   logits tile
                 h_ref):    # (TB, H)  bf16  scratch: cached tanh(fc1)
    n_idx = pl.program_id(1)

    # fc1 + tanh computed once per batch tile (class tile 0 only).
    # NOTE: relies on the class axis being the innermost "arbitrary" grid axis
    # and on scratch persisting across it.  Do not reorder the grid or mark
    # axis 1 "parallel" -- h_ref would go stale.
    @pl.when(n_idx == 0)
    def _():
        h = jnp.dot(x_ref[...], w1_ref[...],
                    preferred_element_type=jnp.float32) + b1_ref[...]
        h_ref[...] = jnp.tanh(h).astype(h_ref.dtype)   # cast once, reused bf16

    # fc2 over the current class tile: single MXU dot, lane-dense (TB, TN) store.
    out = jnp.dot(h_ref[...], w2t_ref[...],
                  preferred_element_type=jnp.float32) + b2_ref[...]
    out_ref[...] = out.astype(out_ref.dtype)


# ------------------------ one-time parameter prep ---------------------------
def prepare_params(emb, w1, b1, w2, b2, *, n_step, m):
    """Hoisted layout prep: transpose / cast / pad once, not per forward call."""
    hidden = w1.shape[0]
    n_class = w2.shape[0]
    k = n_step * m

    tn = min(TN_PREF, _round_up(n_class, 128))        # class tile (lane-aligned)
    n_pad = _round_up(n_class, tn)

    emb_p = jnp.asarray(emb, jnp.float32)                              # (n_class, m)
    w1_p = jnp.asarray(w1, jnp.float32).T                              # (K, hidden)
    b1_p = jnp.asarray(b1, jnp.float32).reshape(1, hidden)
    w2t = jnp.asarray(w2, jnp.float32).T.astype(jnp.bfloat16)          # (hidden, n_class)
    w2t_p = jnp.pad(w2t, ((0, 0), (0, n_pad - n_class)))
    b2_p = jnp.pad(jnp.asarray(b2, jnp.float32).reshape(1, n_class),
                   ((0, 0), (0, n_pad - n_class)))
    return dict(emb=emb_p, w1=w1_p, b1=b1_p, w2t=w2t_p, b2=b2_p,
                n_step=n_step, m=m, k=k, hidden=hidden,
                n_class=n_class, n_pad=n_pad, tn=tn)


# ------------------------------ forward -------------------------------------
def nnlm_forward(x_ids, params):
    """x_ids: (B, n_step) int token ids. Returns logits (B, n_class) f32."""
    emb, w1, b1, w2t, b2 = (params["emb"], params["w1"], params["b1"],
                            params["w2t"], params["b2"])
    k, hidden = params["k"], params["hidden"]
    n_class, n_pad, tn = params["n_class"], params["n_pad"], params["tn"]

    B = x_ids.shape[0]
    tb = min(TB_PREF, _round_up(B, 8))                 # batch tile (sublane-aligned)
    b_pad = _round_up(B, tb)

    # Wrapper-side embedding gather (review option (b)); ids clamped for safety.
    ids = jnp.clip(x_ids.astype(jnp.int32), 0, emb.shape[0] - 1)
    x = jnp.take(emb, ids, axis=0).reshape(B, k)       # (B, n_step*m) f32
    x = jnp.pad(x, ((0, b_pad - B), (0, 0)))

    grid = (b_pad // tb, n_pad // tn)

    # Explicit VMEM budget (generous: covers double-buffering + lane/sublane
    # padding); well under v7x's 64 MiB physical VMEM for these tile sizes.
    tile_bytes = (tb * tn * 4            # out tile
                  + hidden * tn * 2      # w2t tile
                  + tn * 4               # b2 tile
                  + tb * k * 4           # x tile
                  + k * hidden * 4       # w1
                  + hidden * 4           # b1
                  + tb * hidden * 2)     # h scratch
    vmem_limit = int(min(56 * 1024 * 1024,
                         max(32 * 1024 * 1024, 8 * tile_bytes)))

    out = pl.pallas_call(
        _nnlm_kernel,
        out_shape=jax.ShapeDtypeStruct((b_pad, n_pad), jnp.float32),
        grid_spec=pltpu.PrefetchScalarGridSpec(
            num_scalar_prefetch=0,
            grid=grid,
            in_specs=[
                pl.BlockSpec((tb, k),      lambda b, n: (b, 0)),   # x (constant over class axis)
                pl.BlockSpec((k, hidden),  lambda b, n: (0, 0)),   # w1 (whole, tiny)
                pl.BlockSpec((1, hidden),  lambda b, n: (0, 0)),   # b1
                # If the streamed w2t DMA is still exposed at large vocab, add
                # pipeline_mode=pl.Buffered(3) here (costs one extra H*TN*2B buffer).
                pl.BlockSpec((hidden, tn), lambda b, n: (0, n)),   # w2^T tile
                pl.BlockSpec((1, tn),      lambda b, n: (0, n)),   # b2 tile
            ],
            out_specs=pl.BlockSpec((tb, tn), lambda b, n: (b, n)),
            scratch_shapes=[pltpu.VMEM((tb, hidden), jnp.bfloat16)],  # cached tanh(fc1)
        ),
        compiler_params=pltpu.CompilerParams(
            dimension_semantics=("parallel", "arbitrary"),   # batch axis -> megacore split
            vmem_limit_bytes=vmem_limit),
    )(x, w1, b1, w2t, b2)

    return out[:B, :n_class]


# ------------------------- pure-JAX reference --------------------------------
def nnlm_reference(x_ids, emb, w1, b1, w2, b2):
    e = jnp.take(emb, x_ids, axis=0)                 # (B, n_step, m)
    x = e.reshape(x_ids.shape[0], -1)                # (B, n_step*m)
    h = jnp.tanh(x @ w1.T + b1)                      # (B, hidden)
    return h @ w2.T + b2                             # (B, n_class)


if __name__ == "__main__":
    # Model hyper-params implied by the PyTorch module.
    m = 2
    n_step = 2
    input_size = n_step * m        # 4
    hidden_size = 2                # n_hidden
    n_class = 200                  # synthetic vocab size (word_dict size)
    batch = 12

    key = jax.random.PRNGKey(0)
    k_emb, k_w1, k_b1, k_w2, k_b2, k_x = jax.random.split(key, 6)

    # Deterministic synthetic parameters (not a checkpoint).
    emb = jax.random.normal(k_emb, (n_class, m), dtype=jnp.float32) * 0.5
    w1 = jax.random.normal(k_w1, (hidden_size, input_size), dtype=jnp.float32) * 0.5
    b1 = jax.random.normal(k_b1, (hidden_size,), dtype=jnp.float32) * 0.1
    w2 = jax.random.normal(k_w2, (n_class, hidden_size), dtype=jnp.float32) * 0.5
    b2 = jax.random.normal(k_b2, (n_class,), dtype=jnp.float32) * 0.1

    # Input: batch of n_step-length token-id contexts.
    x_ids = jax.random.randint(k_x, (batch, n_step), 0, n_class, dtype=jnp.int32)

    params = prepare_params(emb, w1, b1, w2, b2, n_step=n_step, m=m)
    out = jax.block_until_ready(nnlm_forward(x_ids, params))

    ref = nnlm_reference(x_ids, emb, w1, b1, w2, b2)
    assert out.shape == (batch, n_class)
    # bf16 h / fc2 weight with f32 accumulation -> relaxed tolerance vs f32 ref.
    assert jnp.allclose(out, ref, atol=3e-2, rtol=3e-2), "mismatch vs reference"

    print("KERNEL_OK")
</pallas_src>

<mosaic_0001>
module attributes {stable_mosaic.version = 11 : i64} {
  func.func @_nnlm_kernel(%arg0: i32, %arg1: i32, %arg2: memref<16x4xf32, #tpu.memory_space<vmem>>, %arg3: memref<4x2xf32, #tpu.memory_space<vmem>>, %arg4: memref<1x2xf32, #tpu.memory_space<vmem>>, %arg5: memref<2x256xbf16, #tpu.memory_space<vmem>>, %arg6: memref<1x256xf32, #tpu.memory_space<vmem>>, %arg7: memref<16x256xf32, #tpu.memory_space<vmem>>, %arg8: memref<16x2xbf16, #tpu.memory_space<vmem>>) attributes {dimension_semantics = [#tpu.dimension_semantics<parallel>, #tpu.dimension_semantics<arbitrary>], iteration_bounds = array<i64: 1, 1>, scalar_prefetch = 0 : i64, scratch_operands = 1 : i64, tpu.core_type = #tpu.core_type<tc>, window_params = [{transform_indices = @transform_0, window_bounds = array<i64: 16, 4>}, {pipeline_mode = #tpu.pipeline_mode<synchronous>, transform_indices = @transform_1, window_bounds = array<i64: 4, 2>}, {pipeline_mode = #tpu.pipeline_mode<synchronous>, transform_indices = @transform_2, window_bounds = array<i64: 1, 2>}, {transform_indices = @transform_3, window_bounds = array<i64: 2, 256>}, {transform_indices = @transform_4, window_bounds = array<i64: 1, 256>}, {transform_indices = @transform_5, window_bounds = array<i64: 16, 256>}]} {
    %c0_i32 = arith.constant 0 : i32
    %0 = arith.cmpi eq, %arg1, %c0_i32 : i32
    %1 = arith.extui %0 : i1 to i32
    %c0_i32_0 = arith.constant 0 : i32
    %2 = arith.cmpi ne, %1, %c0_i32_0 : i32
    scf.if %2 {
      %c0_8 = arith.constant 0 : index
      %c0_9 = arith.constant 0 : index
      %10 = vector.load %arg2[%c0_8, %c0_9] : memref<16x4xf32, #tpu.memory_space<vmem>>, vector<16x4xf32>
      %c0_10 = arith.constant 0 : index
      %c0_11 = arith.constant 0 : index
      %11 = vector.load %arg3[%c0_10, %c0_11] : memref<4x2xf32, #tpu.memory_space<vmem>>, vector<4x2xf32>
      %cst_12 = arith.constant dense<0.000000e+00> : vector<16x2xf32>
      %12 = tpu.matmul %10, %11, %cst_12 {dimension_numbers = #tpu.dot_dimension_numbers<[1], [0], [0], [1], [0, 0, 1, 1], [], []>} : vector<16x4xf32>, vector<4x2xf32>, vector<16x2xf32> -> vector<16x2xf32>
      %c0_13 = arith.constant 0 : index
      %c0_14 = arith.constant 0 : index
      %13 = vector.load %arg4[%c0_13, %c0_14] : memref<1x2xf32, #tpu.memory_space<vmem>>, vector<1x2xf32>
      %14 = vector.broadcast %13 : vector<1x2xf32> to vector<16x2xf32>
      %15 = arith.addf %12, %14 : vector<16x2xf32>
      %16 = math.tanh %15 : vector<16x2xf32>
      %17 = arith.truncf %16 : vector<16x2xf32> to vector<16x2xbf16>
      %c0_15 = arith.constant 0 : index
      %c0_16 = arith.constant 0 : index
      %18 = vector.load %arg8[%c0_15, %c0_16] : memref<16x2xbf16, #tpu.memory_space<vmem>>, vector<16x2xbf16>
      tpu.vector_store %arg8[%c0_15, %c0_16], %17 {strides = array<i32>} : memref<16x2xbf16, #tpu.memory_space<vmem>>, vector<16x2xbf16>,
    } else {
    }
    %c0 = arith.constant 0 : index
    %c0_1 = arith.constant 0 : index
    %3 = vector.load %arg8[%c0, %c0_1] : memref<16x2xbf16, #tpu.memory_space<vmem>>, vector<16x2xbf16>
    %c0_2 = arith.constant 0 : index
    %c0_3 = arith.constant 0 : index
    %4 = vector.load %arg5[%c0_2, %c0_3] : memref<2x256xbf16, #tpu.memory_space<vmem>>, vector<2x256xbf16>
    %cst = arith.constant dense<0.000000e+00> : vector<16x256xf32>
    %5 = tpu.matmul %3, %4, %cst {dimension_numbers = #tpu.dot_dimension_numbers<[1], [0], [0], [1], [0, 0, 1, 1], [], []>} : vector<16x2xbf16>, vector<2x256xbf16>, vector<16x256xf32> -> vector<16x256xf32>
    %c0_4 = arith.constant 0 : index
    %c0_5 = arith.constant 0 : index
    %6 = vector.load %arg6[%c0_4, %c0_5] : memref<1x256xf32, #tpu.memory_space<vmem>>, vector<1x256xf32>
    %7 = vector.broadcast %6 : vector<1x256xf32> to vector<16x256xf32>
    %8 = arith.addf %5, %7 : vector<16x256xf32>
    %c0_6 = arith.constant 0 : index
    %c0_7 = arith.constant 0 : index
    %9 = vector.load %arg7[%c0_6, %c0_7] : memref<16x256xf32, #tpu.memory_space<vmem>>, vector<16x256xf32>
    tpu.vector_store %arg7[%c0_6, %c0_7], %8 {strides = array<i32>} : memref<16x256xf32, #tpu.memory_space<vmem>>, vector<16x256xf32>,
    return
  }
  func.func @transform_0(%arg0: i32, %arg1: i32) -> (i32, i32) {
    %c0_i32 = arith.constant 0 : i32
    %c0_i32_0 = arith.constant 0 : i32
    return %arg0, %c0_i32 : i32, i32
  }
  func.func @transform_1(%arg0: i32, %arg1: i32) -> (i32, i32) {
    %c0_i32 = arith.constant 0 : i32
    %c0_i32_0 = arith.constant 0 : i32
    %c0_i32_1 = arith.constant 0 : i32
    return %c0_i32, %c0_i32_0 : i32, i32
  }
  func.func @transform_2(%arg0: i32, %arg1: i32) -> (i32, i32) {
    %c0_i32 = arith.constant 0 : i32
    %c0_i32_0 = arith.constant 0 : i32
    %c0_i32_1 = arith.constant 0 : i32
    return %c0_i32, %c0_i32_0 : i32, i32
  }
  func.func @transform_3(%arg0: i32, %arg1: i32) -> (i32, i32) {
    %c0_i32 = arith.constant 0 : i32
    %c0_i32_0 = arith.constant 0 : i32
    return %c0_i32, %arg1 : i32, i32
  }
  func.func @transform_4(%arg0: i32, %arg1: i32) -> (i32, i32) {
    %c0_i32 = arith.constant 0 : i32
    %c0_i32_0 = arith.constant 0 : i32
    return %c0_i32, %arg1 : i32, i32
  }
  func.func @transform_5(%arg0: i32, %arg1: i32) -> (i32, i32) {
    %c0_i32 = arith.constant 0 : i32
    return %arg0, %arg1 : i32, i32
  }
}

</mosaic_0001>

<bundles_post_ra>
// kernel: tpu_custom_call.1
= control target key start
LH: loop header
LB: loop body
LE: loop exit
PB: predicated region body
PF: predicated region fallthrough
CT: control target
= control target key end

     0   :  { %vm43_vm0 = vcmask 1043456   ;;  %vm36_vm1 = vcmask 31744   ;;  %s360_s0 = inlined_call_operand.vmem [shape: f32[16,4], index: 0, kind: input, shape index: {}]   ;;  %s361_s1 = inlined_call_operand.vmem [shape: f32[4,2], index: 1, kind: input, shape index: {}]   ;;  %s362_s2 = inlined_call_operand.vmem [shape: f32[1,2], index: 2, kind: input, shape index: {}]   ;;  %s363_s3 = inlined_call_operand.vmem [shape: bf16[2,256], index: 3, kind: input, shape index: {}]   ;;  %s364_s4 = inlined_call_operand.vmem [shape: f32[1,256], index: 4, kind: input, shape index: {}]   ;;  %s365_s5 = inlined_call_operand.hbm [shape: f32[16,256], index: 5, kind: output, shape index: {}]  }
   0x1   :  { %v28_v0 = vld [vmem:[%s361_s1] sm:$0xf]  ;;  %v27_v2 = vld [vmem:[%s360_s0 + $0x8] sm:$0xff] }
   0x2   :  { %v26_v1 = vld [vmem:[%s360_s0] sm:$0xff]  ;;  %267 = vmatprep.subr.msk.mxu0 %vm43_vm0, %v28_v0 }
   0x3   :  { %269 = vmatprep.mubr.msk.f32.mxu0 %vm36_vm1, %v26_v1 }
   0x4   :  { %10 = vsyncpa [#allocation4], 0  ;;  %268 = vmatpush3.msk.msra.mxu0 %vm43_vm0, %v28_v0  ;;  %v140_v3 = vlaneseq  ;;  %v304_v4 = vmov 1966171168   ;;  %v305_v11 = vmov 0   ;;  %vm182_vm2 = vcmask 1040384  }
   0x5   :  { %270 = vmatmul.mubr.msk.f32.vlgmr.msra.gmra.mxu0 %vm36_vm1, %v27_v2  ;;  %v165_v5 = vunpack.c.l.s4 %v304_v4  ;;  %v259_v8 = vld.sshfl [vmem:[%s363_s3] sm:$0x11 pattern:$0x75316420]  ;;  %221 = vmatprep.mubr.bf16.mxu1 %v305_v11  ;;  %vm132_vm3 = vcmask 11264   ;;  %vm178_vm4 = vcmask 15360  }
   0x6   :  { %v141_v6 = vshrl.u32 %v140_v3, 7  ;;  %v163_v9 = vcombine.high %v259_v8, %v259_v8  ;;  %v252_v15 = vld [vmem:[%s362_s2] ss:$0 sm:$0xff]  ;;  %s306_s2 = smov [#allocation3]  }
   0x7   :  { %v166_v7 = vunpack.c.0.s8 %v165_v5  ;;  %v138_v26 = vld [vmem:[%s364_s4] sm:$0x3]  ;;  %s241_s27 = sshll.u32 %s306_s2, 4  ;;  %s242_s27 = int_to_ptr.vmem [resolvable:$true] %s241_s27 }
   0x8   :  { %v142_v25 = vsub.s32 0, %v141_v6  ;;  %v146_v27 = vsub.s32 1, %v141_v6  ;;  %s282_s28 = scalar_lea.vmem %s242_s27, 512  ;;  %p287_p1 = scmp.lt.s32.totalorder %s242_s27, %s242_s27 }
   0x9   :  { %v169_v10 = vsub.s32 %v166_v7, %v141_v6  ;;  %p283_p0 = scmp.ne.s32.totalorder %s242_s27, %s282_s28  ;;  %p288_p2 = scmp.lt.s32.totalorder %s282_s28, %s282_s28 }
   0xa   :  { %v143_v28 = vrot.slane %v138_v26, %v142_v25  ;;  %v147_v29 = vrot.slane %v138_v26, %v146_v27 }
   0xb   :  { %v177_v12 = vrot.slane %v163_v9, %v169_v10  ;;  %v170_v13 = vrot.slane %v259_v8, %v169_v10  ;;  %p289_p3 = por %p288_p2, %p287_p1 }
   0xd   :  { %260 = vmatprep.subr.msk.bf16.mxu1 %vm182_vm2, %v177_v12  ;;  %v184_v14 = vsel %vm182_vm2, %v170_v13, 0  ;;  %p290_p4 = pnand %p289_p3, %p283_p0 }
   0xe   :  { %204 = vmatpush1.bf16.msra.mxu1 %v184_v14 }
  0xc5   :  { %v271_v16 = vpop.f32.mrf.mxu0 }
  0xc6   :  { %v119_v17 = vadd.f32 %v271_v16, %v252_v15 }
  0xc7   :  { %v113_v18 = vpop.f32.mrf.mxu0 }
  0xc8   :  { %278 = vtanh.f32 %v119_v17  ;;  %v114_v19 = vadd.f32 %v252_v15, %v113_v18 }
  0xca   :  { %280 = vtanh.f32 %v114_v19 }
  0xd5   :  { %v279_v20 = vpop.eup %278 }
  0xd6   :  { %v263_v21 = vpack.c.bf16 %v279_v20, %v279_v20 }
  0xd7   :  { %v281_v22 = vpop.eup %280 }
  0xd8   :  { %134 = vst.msk [vmem:[#allocation2 + $0x4] sm:$0xf] %vm132_vm3, %v263_v21  ;;  %v262_v23 = vpack.c.bf16 %v281_v22, %v281_v22 }
  0xda   :  { %133 = vst.msk [vmem:[#allocation2] sm:$0xf] %vm132_vm3, %v262_v23 }
  0xe1   :  { %v277_v24 = vld [vmem:[#allocation2] sm:$0xff]  }
  0xe2   :  { %261 = vmatmul.mubr.msk.bf16.vlgmr.msra.gmra.mxu1 %vm178_vm4, %v277_v24 }
 0x1a2   :  { %v223_v30 = vpop.f32.mrf.mxu1 }
 0x1a3   :  { %v224_v31 = vadd.f32 %v223_v30, %v143_v28 }
 0x1a4   :  { %v225_v32 = vpop.f32.mrf.mxu1 }
 0x1a5   :  { %232 = vst [vmem:[#allocation3] sm:$0xff] %v224_v31  ;;  %v226_v33 = vadd.f32 %v225_v32, %v147_v29 }
 0x1a6   :  { %v227_v34 = vpop.f32.mrf.mxu1 }
 0x1a7   :  { %233 = vst [vmem:[#allocation3 + $0x8] sm:$0xff] %v226_v33  ;;  %v228_v35 = vadd.f32 %v227_v34, %v143_v28 }
 0x1a8   :  { %v229_v36 = vpop.f32.mrf.mxu1 }
 0x1a9   :  { %234 = vst [vmem:[#allocation3 + $0x10] sm:$0xff] %v228_v35  ;;  %v230_v37 = vadd.f32 %v229_v36, %v147_v29 }
 0x1ab   :  { %235 = vst [vmem:[#allocation3 + $0x18] sm:$0xff] %v230_v37 }
 0x1ac   :  { %293 = shalt.err (!%p290_p4)
}
 0x1ad   :  { %s307_s4 = smov 256   ;;  %s308_s29 = smov 16  }
 0x1ae   :  { %247 = dma.vmem_to_hbm [thread:$0]  %s242_s27, 512, %s365_s5, [#allocation4], %s307_s4, %s307_s4, %s308_s29  }
 0x1af   :  { %302 = dma.done.wait [#allocation4], 512  }
 0x1b0   :  { %303 = vsyncadd [#allocation4], 4294966784 }
 0x1b1   :  { %251 = vsyncpa [#allocation4], 1 }

</bundles_post_ra>
